<compile_context>
chip_gen: v6e
topology: v6e:2x2x1
jax: 0.10.0
libtpu: 0.0.40
codegen_flags: <defaults>
</compile_context>

<pallas_src>
import functools

import jax
import jax.numpy as jnp
from jax.experimental import pallas as pl
from jax.experimental.pallas import tpu as pltpu

# ITU-R 601-2 luma coefficients (same as torchvision.rgb_to_grayscale).
_R_W, _G_W, _B_W = 0.2989, 0.587, 0.114

_MIN_GRID_BLOCKS = 2  # guarantee >=2 steps when possible (pipelining / megacore)


def _gray_kernel(x_ref, o_ref, *, is_integer):
    # x_ref: (3, BR, LANES)   o_ref: (num_output_channels, BR, LANES)
    r = x_ref[0]
    g = x_ref[1]
    b = x_ref[2]
    if is_integer:
        r = r.astype(jnp.float32)
        g = g.astype(jnp.float32)
        b = b.astype(jnp.float32)
    # Weak-typed Python-float coefficients keep bf16 math in bf16 on v6e/v7x
    # (and f32 math in f32); no unconditional promotion.
    gray = _R_W * r + _G_W * g + _B_W * b
    # Direct cast: truncation for integer dtypes matches PyTorch's `.to(dtype)`.
    gray = gray.astype(o_ref.dtype)
    # Per-channel stores (1 or 3) instead of a broadcast_to temp.  noc=3 triples
    # output HBM traffic by definition of the requested shape; prefer noc=1
    # upstream when the consumer can broadcast.
    for c in range(o_ref.shape[0]):
        o_ref[c, :, :] = gray


def _round_up(x: int, m: int) -> int:
    return ((x + m - 1) // m) * m


def rgb_to_grayscale_video(clip: jax.Array, num_output_channels: int = 1) -> jax.Array:
    """clip: [3, T, H, W] array -> [num_output_channels, T, H, W]."""
    C, T, H, W = clip.shape
    assert C == 3, "rgb_to_grayscale_video expects 3 input channels"
    assert num_output_channels in (1, 3)

    dtype = clip.dtype
    itemsize = jnp.dtype(dtype).itemsize
    is_integer = bool(jnp.issubdtype(dtype, jnp.integer))

    # ---- Lane-dense view of the pixel stream (pad only when unavoidable). ----
    n = T * H * W
    lanes = None
    for cand in (512, 256, 128):
        if n % cand == 0:
            lanes = cand
            break
    needs_pad = lanes is None
    if needs_pad:
        # Rare fallback (n not a multiple of 128): pad the flat stream once.
        lanes = 128
        n_work = _round_up(n, lanes)
    else:
        n_work = n
    rows = n_work // lanes

    # ---- Dtype-aware block sizing. ----
    sublane_mult = max(8, 32 // itemsize)          # 8 f32 / 16 bf16 / 32 int8
    max_block_rows = 1024 if itemsize >= 4 else 2048

    num_blocks = pl.cdiv(rows, max_block_rows)
    target_blocks = max(num_blocks, _MIN_GRID_BLOCKS)
    block_rows = _round_up(pl.cdiv(rows, target_blocks), sublane_mult)
    num_blocks = pl.cdiv(rows, block_rows)          # Pallas masks the partial tail

    flat = clip.reshape(3, n)                       # contiguous: C is leading
    if needs_pad:
        flat = jnp.pad(flat, ((0, 0), (0, n_work - n)))
    x = flat.reshape(3, rows, lanes)

    # Double-buffered in + out, plus headroom; well under 64 MiB on v7x.
    in_block_bytes = 3 * block_rows * lanes * itemsize
    out_block_bytes = num_output_channels * block_rows * lanes * itemsize
    vmem_limit = int(2 * (in_block_bytes + out_block_bytes) + (8 << 20))

    cost = pl.CostEstimate(
        flops=5 * n,
        transcendentals=0,
        bytes_accessed=(3 + num_output_channels) * n * itemsize,
    )

    out = pl.pallas_call(
        functools.partial(_gray_kernel, is_integer=is_integer),
        out_shape=jax.ShapeDtypeStruct((num_output_channels, rows, lanes), dtype),
        grid=(num_blocks,),
        in_specs=[
            pl.BlockSpec((3, block_rows, lanes), lambda i: (0, i, 0)),
        ],
        out_specs=pl.BlockSpec(
            (num_output_channels, block_rows, lanes), lambda i: (0, i, 0)
        ),
        compiler_params=pltpu.CompilerParams(
            dimension_semantics=("parallel",),
            vmem_limit_bytes=vmem_limit,
        ),
        cost_estimate=cost,
    )(x)

    out = out.reshape(num_output_channels, n_work)
    if needs_pad:
        out = out[:, :n]
    return out.reshape(num_output_channels, T, H, W)


class GrayscaleVideo:
    """JAX/Pallas port of the PyTorch GrayscaleVideo module."""

    def __init__(self, num_output_channels: int = 1):
        self.num_output_channels = num_output_channels

    def __call__(self, clip: jax.Array) -> jax.Array:
        return rgb_to_grayscale_video(clip, self.num_output_channels)


if __name__ == "__main__":
    key = jax.random.PRNGKey(0)
    C, T, H, W = 3, 4, 16, 16
    clip = jax.random.uniform(key, (C, T, H, W), dtype=jnp.float32)

    # num_output_channels = 1
    out1 = GrayscaleVideo(num_output_channels=1)(clip)
    out1 = jax.block_until_ready(out1)

    # num_output_channels = 3 (r == g == b)
    out3 = GrayscaleVideo(num_output_channels=3)(clip)
    out3 = jax.block_until_ready(out3)

    # Sanity check against a plain-JAX reference (float path).
    ref = (_R_W * clip[0] + _G_W * clip[1] + _B_W * clip[2])[None]
    assert out1.shape == (1, T, H, W)
    assert out3.shape == (3, T, H, W)
    assert jnp.allclose(out1, ref, atol=1e-5)
    assert jnp.allclose(out3, jnp.broadcast_to(ref, (3, T, H, W)), atol=1e-5)
    assert jnp.allclose(out3[0], out3[1]) and jnp.allclose(out3[1], out3[2])

    # uint8 path: compute in f32, truncate on cast (matches PyTorch .to(dtype)).
    clip_u8 = jax.random.randint(key, (C, T, H, W), 0, 256, dtype=jnp.int32).astype(
        jnp.uint8
    )
    out_u8 = jax.block_until_ready(GrayscaleVideo(1)(clip_u8))
    ref_u8 = (
        _R_W * clip_u8[0].astype(jnp.float32)
        + _G_W * clip_u8[1].astype(jnp.float32)
        + _B_W * clip_u8[2].astype(jnp.float32)
    ).astype(jnp.uint8)[None]
    assert out_u8.shape == (1, T, H, W)
    assert jnp.max(
        jnp.abs(out_u8.astype(jnp.int32) - ref_u8.astype(jnp.int32))
    ) <= 1

    print("KERNEL_OK")
</pallas_src>

<mosaic_0001>
module attributes {stable_mosaic.version = 11 : i64} {
  func.func @_gray_kernel(%arg0: i32, %arg1: memref<3x8x512xf32, #tpu.memory_space<vmem>>, %arg2: memref<1x8x512xf32, #tpu.memory_space<vmem>>) attributes {dimension_semantics = [#tpu.dimension_semantics<parallel>], iteration_bounds = array<i64: 1>, scalar_prefetch = 0 : i64, scratch_operands = 0 : i64, tpu.core_type = #tpu.core_type<tc>, window_params = [{transform_indices = @transform_0, window_bounds = array<i64: 3, 8, 512>}, {transform_indices = @transform_1, window_bounds = array<i64: 1, 8, 512>}]} {
    %c0 = arith.constant 0 : index
    %c0_0 = arith.constant 0 : index
    %c0_1 = arith.constant 0 : index
    %0 = vector.load %arg1[%c0, %c0_0, %c0_1] : memref<3x8x512xf32, #tpu.memory_space<vmem>>, vector<1x8x512xf32>
    %1 = vector.shape_cast %0 : vector<1x8x512xf32> to vector<8x512xf32>
    %c1 = arith.constant 1 : index
    %c0_2 = arith.constant 0 : index
    %c0_3 = arith.constant 0 : index
    %2 = vector.load %arg1[%c1, %c0_2, %c0_3] : memref<3x8x512xf32, #tpu.memory_space<vmem>>, vector<1x8x512xf32>
    %3 = vector.shape_cast %2 : vector<1x8x512xf32> to vector<8x512xf32>
    %c2 = arith.constant 2 : index
    %c0_4 = arith.constant 0 : index
    %c0_5 = arith.constant 0 : index
    %4 = vector.load %arg1[%c2, %c0_4, %c0_5] : memref<3x8x512xf32, #tpu.memory_space<vmem>>, vector<1x8x512xf32>
    %5 = vector.shape_cast %4 : vector<1x8x512xf32> to vector<8x512xf32>
    %cst = arith.constant 2.989000e-01 : f32
    %6 = vector.broadcast %cst : f32 to vector<8x512xf32>
    %7 = arith.mulf %6, %1 : vector<8x512xf32>
    %cst_6 = arith.constant 5.870000e-01 : f32
    %8 = vector.broadcast %cst_6 : f32 to vector<8x512xf32>
    %9 = arith.mulf %8, %3 : vector<8x512xf32>
    %10 = arith.addf %7, %9 : vector<8x512xf32>
    %cst_7 = arith.constant 1.140000e-01 : f32
    %11 = vector.broadcast %cst_7 : f32 to vector<8x512xf32>
    %12 = arith.mulf %11, %5 : vector<8x512xf32>
    %13 = arith.addf %10, %12 : vector<8x512xf32>
    %c0_8 = arith.constant 0 : index
    %c0_9 = arith.constant 0 : index
    %c0_10 = arith.constant 0 : index
    %14 = vector.load %arg2[%c0_8, %c0_9, %c0_10] : memref<1x8x512xf32, #tpu.memory_space<vmem>>, vector<1x8x512xf32>
    %15 = vector.shape_cast %14 : vector<1x8x512xf32> to vector<8x512xf32>
    %16 = vector.shape_cast %13 : vector<8x512xf32> to vector<1x8x512xf32>
    tpu.vector_store %arg2[%c0_8, %c0_9, %c0_10], %16 {strides = array<i32>} : memref<1x8x512xf32, #tpu.memory_space<vmem>>, vector<1x8x512xf32>,
    return
  }
  func.func @transform_0(%arg0: i32) -> (i32, i32, i32) {
    %c0_i32 = arith.constant 0 : i32
    %c0_i32_0 = arith.constant 0 : i32
    %c0_i32_1 = arith.constant 0 : i32
    return %c0_i32, %arg0, %c0_i32_0 : i32, i32, i32
  }
  func.func @transform_1(%arg0: i32) -> (i32, i32, i32) {
    %c0_i32 = arith.constant 0 : i32
    %c0_i32_0 = arith.constant 0 : i32
    %c0_i32_1 = arith.constant 0 : i32
    return %c0_i32, %arg0, %c0_i32_0 : i32, i32, i32
  }
}

</mosaic_0001>

<bundles_post_ra>
// kernel: tpu_custom_call.1
= control target key start
LH: loop header
LB: loop body
LE: loop exit
PB: predicated region body
PF: predicated region fallthrough
CT: control target
= control target key end

     0   :  { %6 = vsyncpa [#allocation3], 0  ;;  %s165_s0 = inlined_call_operand.hbm [shape: f32[3,2,512], index: 0, kind: input, shape index: {}]   ;;  %s166_s1 = inlined_call_operand.hbm [shape: f32[1,2,512], index: 1, kind: output, shape index: {}]  }
   0x1   :  { %7 = vsyncpa [#allocation4], 0 }
   0x2   :  { %12 = vsyncadd [#allocation3], 1152  ;;  %s17_s6 = sld [smem:[#allocation0]]   ;;  %s139_s7 = smov [#allocation2]  }
   0x3   :  { %s25_s8 = sshll.u32 %s139_s7, 4  ;;  %s140_s9 = smov 128   ;;  %s26_s8 = int_to_ptr.vmem [resolvable:$true] %s25_s8 }
   0x4   :  { %32 = sst [smem:[#allocation7]] %s140_s9  ;;  %s141_s10 = smov 512  }
   0x5   :  { %34 = sst [smem:[#allocation7 + $0x1]] %s141_s10  ;;  %s142_s11 = smov 1  }
   0x6   :  { %36 = sst [smem:[#allocation7 + $0x2]] %s142_s11  ;;  %s143_s14 = smov 8  }
   0x7   :  { %38 = sst [smem:[#allocation7 + $0x3]] %s140_s9  ;;  %s144_s15 = smov [#allocation3]  }
   0x8   :  { %s103_s12 = sshll.u32 %s17_s6, 26  ;;  %40 = sst [smem:[#allocation7 + $0x4]] %s140_s9 }
   0x9   :  { %s104_s13 = sadd.s32 134217728, %s103_s12  ;;  %42 = sst [smem:[#allocation7 + $0x5]] %s143_s14 }
   0xa   :  { %s145_s16 = smov 131072  }
   0xb   :  { %44 = dma.general %s165_s0, 384, %s26_s8, %s144_s15, %s145_s16, [#allocation7], %s104_s13, 0  }
   0xc   :  { %135 = dma.done.wait [#allocation3], 1536  }
   0xd   :  { %136 = vsyncadd [#allocation3], 4294965760  ;;  %v48_v0 = vld [vmem:[#allocation2] sm:$0xff]  ;;  %v49_v6 = vld [vmem:[#allocation2 + $0x8] sm:$0xff] }
   0xe   :  { %v53_v1 = vld [vmem:[#allocation2 + $0x20] sm:$0xff]  ;;  %v62_v3 = vmul.f32 0.2989, %v48_v0  ;;  %v54_v7 = vld [vmem:[#allocation2 + $0x28] sm:$0xff]  ;;  %v63_v10 = vmul.f32 0.2989, %v49_v6 }
   0xf   :  { %v58_v2 = vld [vmem:[#allocation2 + $0x40] sm:$0xff]  ;;  %v66_v4 = vmul.f32 0.587, %v53_v1  ;;  %v59_v8 = vld [vmem:[#allocation2 + $0x48] sm:$0xff]  ;;  %v67_v11 = vmul.f32 0.587, %v54_v7 }
  0x10   :  { %v74_v5 = vmul.f32 0.114, %v58_v2  ;;  %v75_v12 = vmul.f32 0.114, %v59_v8  ;;  %v50_v13 = vld [vmem:[#allocation2 + $0x10] sm:$0xff]  ;;  %v51_v20 = vld [vmem:[#allocation2 + $0x18] sm:$0xff] }
  0x11   :  { %v70_v9 = vadd.f32 %v66_v4, %v62_v3  ;;  %v55_v14 = vld [vmem:[#allocation2 + $0x30] sm:$0xff]  ;;  %v71_v17 = vadd.f32 %v67_v11, %v63_v10  ;;  %v64_v18 = vmul.f32 0.2989, %v50_v13  ;;  %v56_v21 = vld [vmem:[#allocation2 + $0x38] sm:$0xff]  ;;  %v65_v24 = vmul.f32 0.2989, %v51_v20 }
  0x12   :  { %v60_v15 = vld [vmem:[#allocation2 + $0x50] sm:$0xff]  ;;  %v68_v19 = vmul.f32 0.587, %v55_v14  ;;  %v61_v23 = vld [vmem:[#allocation2 + $0x58] sm:$0xff]  ;;  %v69_v27 = vmul.f32 0.587, %v56_v21 }
  0x13   :  { %v78_v16 = vadd.f32 %v74_v5, %v70_v9  ;;  %v76_v22 = vmul.f32 0.114, %v60_v15  ;;  %v79_v25 = vadd.f32 %v75_v12, %v71_v17  ;;  %v77_v28 = vmul.f32 0.114, %v61_v23 }
  0x14   :  { %v72_v26 = vadd.f32 %v68_v19, %v64_v18  ;;  %v73_v30 = vadd.f32 %v69_v27, %v65_v24 }
  0x15   :  { %82 = vst [vmem:[#allocation5] sm:$0xff] %v78_v16  ;;  %83 = vst [vmem:[#allocation5 + $0x8] sm:$0xff] %v79_v25 }
  0x16   :  { %v80_v29 = vadd.f32 %v76_v22, %v72_v26  ;;  %v81_v31 = vadd.f32 %v77_v28, %v73_v30 }
  0x18   :  { %84 = vst [vmem:[#allocation5 + $0x10] sm:$0xff] %v80_v29  ;;  %85 = vst [vmem:[#allocation5 + $0x18] sm:$0xff] %v81_v31 }
  0x19   :  { %90 = vsyncadd [#allocation4], 384  ;;  %s146_s0 = smov [#allocation5]  }
  0x1a   :  { %s91_s19 = sshll.u32 %s146_s0, 4  ;;  %s92_s19 = int_to_ptr.vmem [resolvable:$true] %s91_s19 }
  0x1b   :  { %s115_s20 = scalar_lea.vmem %s92_s19, 128  ;;  %s119_s21 = scalar_lea.vmem %s92_s19, 512 }
  0x1c   :  { %p116_p0 = scmp.ne.s32.totalorder %s92_s19, %s115_s20  ;;  %p120_p1 = scmp.lt.s32.totalorder %s92_s19, %s92_s19 }
  0x1d   :  { %p121_p2 = scmp.lt.s32.totalorder %s119_s21, %s115_s20 }
  0x1f   :  { %p122_p3 = por %p121_p2, %p120_p1 }
  0x21   :  { %p123_p4 = pnand %p122_p3, %p116_p0 }
  0x23   :  { %126 = shalt.err (!%p123_p4)
}
  0x24   :  { %s147_s22 = smov 128   ;;  %s148_s23 = smov 8  }
  0x25   :  { %97 = dma.vmem_to_hbm [thread:$0]  %s92_s19, 128, %s166_s1, [#allocation4], %s147_s22, %s147_s22, %s148_s23  }
  0x26   :  { %137 = dma.done.wait [#allocation4], 512  }
  0x27   :  { %138 = vsyncadd [#allocation4], 4294966784 }
  0x28   :  { %101 = vsyncpa [#allocation3], 1 }
  0x29   :  { %102 = vsyncpa [#allocation4], 1 }

</bundles_post_ra>
